<compile_context>
chip_gen: v5e
topology: v5e:2x2
jax: 0.10.0
libtpu: 0.0.40
codegen_flags: <defaults>
</compile_context>

<pallas_src>
import jax
import jax.numpy as jnp
from jax import lax
from jax.experimental import pallas as pl
from jax.experimental.pallas import tpu as pltpu


def _fcuup_kernel(x_ref, w_ref, p_ref, shift_ref, o_ref):
    # x_ref:     (bb, N, C)    tokens incl. class token (original dtype, e.g. f32)
    # w_ref:     (Cout, C)     1x1-conv weight with BN scale pre-folded (compute dtype)
    # p_ref:     (N, T)        0/1 class-drop + nearest-upsample matrix (compute dtype)
    # shift_ref: (Cout, 1)     fused conv-bias + BN shift (f32)
    # o_ref:     (bb, Cout, T) final upsampled feature map, T = H*up * W*up
    w = w_ref[...]
    p = p_ref[...].astype(jnp.float32)          # entries are exactly 0/1
    shift = shift_ref[...]
    bb = x_ref.shape[0]
    for i in range(bb):                          # small static unroll over batch slice
        x_i = x_ref[i].astype(w.dtype)           # cast to compute dtype in VMEM
        # (Cout, N) = W[Cout,C] . X[N,C]^T  -- tokens stay on lanes.
        y = lax.dot_general(w, x_i, (((1,), (1,)), ((), ())),
                            preferred_element_type=jnp.float32)
        y = jnp.maximum(y + shift, 0.0)          # f32 epilogue: BN shift + ReLU
        # (Cout, T): replicate each pixel to its up x up output block, drop cls token.
        o = lax.dot_general(y, p, (((1,), (0,)), ((), ())),
                            preferred_element_type=jnp.float32,
                            precision=lax.Precision.HIGHEST)
        o_ref[i] = o.astype(o_ref.dtype)


def fcu_up(x, H, W, params, up_stride, eps=1e-6,
           compute_dtype=jnp.bfloat16, out_dtype=jnp.float32):
    """x: [B, 1+H*W, C] tokens. Returns NCHW [B, Cout, H*up, W*up] in out_dtype."""
    B, N, C = x.shape
    assert N == 1 + H * W
    up = up_stride
    Hup, Wup = H * up, W * up
    T = Hup * Wup

    w = params["conv_w"]                  # [C, Cout]  (1x1 conv kernel, squeezed)
    b = params["conv_b"]                  # [Cout]
    gamma, beta = params["bn_gamma"], params["bn_beta"]
    mean, var = params["bn_mean"], params["bn_var"]
    Cout = w.shape[1]

    # Fold conv bias + inference BatchNorm into weight scale + per-channel shift:
    #   bn(x@W + b) = x @ (W*s) + (beta + (b - mean)*s),  s = gamma / sqrt(var+eps)
    scale = gamma.astype(jnp.float32) * lax.rsqrt(var.astype(jnp.float32) + eps)
    w_t = (w.astype(jnp.float32) * scale[None, :]).T.astype(compute_dtype)   # [Cout, C]
    shift = (beta.astype(jnp.float32)
             + (b.astype(jnp.float32) - mean.astype(jnp.float32)) * scale
             ).reshape(Cout, 1)                                              # f32

    # Class-token drop + 2-D nearest upsample as one 0/1 matrix:
    # output pixel (ho, wo) reads token 1 + (ho//up)*W + (wo//up); row 0 (cls) is 0.
    src = ((jnp.arange(Hup)[:, None] // up) * W
           + (jnp.arange(Wup)[None, :] // up)).reshape(-1)                   # [T]
    p_mat = (jnp.arange(N)[:, None] == (1 + src)[None, :]).astype(compute_dtype)  # [N, T]

    # <=2 "parallel" grid steps over batch: 2 feeds both v7x TensorCores,
    # and avoids per-batch step overhead on single-TC v5e/v6e.
    nsteps = 2 if (B >= 2 and B % 2 == 0) else 1
    bb = B // nsteps

    x_isz = jnp.dtype(x.dtype).itemsize
    c_isz = jnp.dtype(compute_dtype).itemsize
    o_isz = jnp.dtype(out_dtype).itemsize
    cost = pl.CostEstimate(
        flops=2 * B * N * C * Cout + 2 * B * Cout * N * T,
        transcendentals=0,
        bytes_accessed=(B * N * C * x_isz + Cout * C * c_isz + N * T * c_isz
                        + Cout * 4 + B * Cout * T * o_isz),
    )

    out = pl.pallas_call(
        _fcuup_kernel,
        out_shape=jax.ShapeDtypeStruct((B, Cout, T), out_dtype),
        grid=(nsteps,),
        in_specs=[
            pl.BlockSpec((bb, N, C), lambda i: (i, 0, 0)),   # tokens (class tok incl.)
            pl.BlockSpec((Cout, C), lambda i: (0, 0)),       # BN-folded weight
            pl.BlockSpec((N, T), lambda i: (0, 0)),          # drop+upsample matrix
            pl.BlockSpec((Cout, 1), lambda i: (0, 0)),       # fused shift
        ],
        out_specs=pl.BlockSpec((bb, Cout, T), lambda i: (i, 0, 0)),
        compiler_params=pltpu.CompilerParams(dimension_semantics=("parallel",)),
        cost_estimate=cost,
    )(x, w_t, p_mat, shift)                                  # [B, Cout, T]

    # Free contiguous reshape to NCHW of the upsampled map.
    return out.reshape(B, Cout, Hup, Wup)


def _reference_f32(x, H, W, params, up_stride, eps=1e-6):
    """Plain-JAX f32 reference matching the PyTorch module (eval mode)."""
    B, N, C = x.shape
    x_r = x[:, 1:, :].transpose(0, 2, 1).reshape(B, C, H, W)
    y = jnp.einsum("bchw,co->bohw", x_r, params["conv_w"])
    y = y + params["conv_b"][None, :, None, None]
    y = (y - params["bn_mean"][None, :, None, None]) * lax.rsqrt(
        params["bn_var"][None, :, None, None] + eps)
    y = y * params["bn_gamma"][None, :, None, None] + params["bn_beta"][None, :, None, None]
    y = jnp.maximum(y, 0.0)
    return jnp.repeat(jnp.repeat(y, up_stride, axis=2), up_stride, axis=3)


if __name__ == "__main__":
    # Small shapes consistent with FCUUp: inplanes=32, outplanes=16, H=W=8, up_stride=2
    B, C, Cout, H, W, up_stride = 2, 32, 16, 8, 8, 2
    eps = 1e-6

    key = jax.random.PRNGKey(0)
    k1, k2, k3, k4, k5, k6, k7 = jax.random.split(key, 7)
    x = jax.random.normal(k1, (B, 1 + H * W, C), jnp.float32)
    params = dict(
        conv_w=0.1 * jax.random.normal(k2, (C, Cout), jnp.float32),
        conv_b=0.1 * jax.random.normal(k3, (Cout,), jnp.float32),
        bn_gamma=1.0 + 0.1 * jax.random.normal(k4, (Cout,), jnp.float32),
        bn_beta=0.1 * jax.random.normal(k5, (Cout,), jnp.float32),
        bn_mean=0.1 * jax.random.normal(k6, (Cout,), jnp.float32),
        bn_var=jnp.abs(jax.random.normal(k7, (Cout,), jnp.float32)) + 0.5,
    )

    ref = _reference_f32(x, H, W, params, up_stride, eps=eps)

    # 1) f32 compute path, f32 output: tight check against the PyTorch-equivalent ref.
    out_f32 = jax.block_until_ready(
        fcu_up(x, H, W, params, up_stride, eps=eps,
               compute_dtype=jnp.float32, out_dtype=jnp.float32))
    assert out_f32.shape == (B, Cout, H * up_stride, W * up_stride), out_f32.shape
    assert jnp.allclose(out_f32, ref, atol=5e-4, rtol=5e-4), float(
        jnp.max(jnp.abs(out_f32 - ref)))

    # 2) bf16 compute + bf16 output (perf-recommended path): loose check vs f32 ref.
    out_bf16 = jax.block_until_ready(
        fcu_up(x, H, W, params, up_stride, eps=eps,
               compute_dtype=jnp.bfloat16, out_dtype=jnp.bfloat16))
    assert out_bf16.shape == (B, Cout, H * up_stride, W * up_stride), out_bf16.shape
    assert jnp.allclose(out_bf16.astype(jnp.float32), ref, atol=3e-2, rtol=3e-2), float(
        jnp.max(jnp.abs(out_bf16.astype(jnp.float32) - ref)))

    # TODO(synk): BatchNorm is implemented in inference mode (running stats);
    # training-mode batch statistics are out of scope for this forward kernel.
    print("KERNEL_OK")
</pallas_src>

<mosaic_0001>
module attributes {stable_mosaic.version = 11 : i64} {
  func.func @_fcuup_kernel(%arg0: i32, %arg1: memref<1x65x32xf32, #tpu.memory_space<vmem>>, %arg2: memref<16x32xf32, #tpu.memory_space<vmem>>, %arg3: memref<65x256xf32, #tpu.memory_space<vmem>>, %arg4: memref<16x1xf32, #tpu.memory_space<vmem>>, %arg5: memref<1x16x256xf32, #tpu.memory_space<vmem>>) attributes {dimension_semantics = [#tpu.dimension_semantics<parallel>], iteration_bounds = array<i64: 2>, scalar_prefetch = 0 : i64, scratch_operands = 0 : i64, tpu.core_type = #tpu.core_type<tc>, window_params = [{transform_indices = @transform_0, window_bounds = array<i64: 1, 65, 32>}, {pipeline_mode = #tpu.pipeline_mode<synchronous>, transform_indices = @transform_1, window_bounds = array<i64: 16, 32>}, {pipeline_mode = #tpu.pipeline_mode<synchronous>, transform_indices = @transform_2, window_bounds = array<i64: 65, 256>}, {pipeline_mode = #tpu.pipeline_mode<synchronous>, transform_indices = @transform_3, window_bounds = array<i64: 16, 1>}, {transform_indices = @transform_4, window_bounds = array<i64: 1, 16, 256>}]} {
    %c0 = arith.constant 0 : index
    %c0_0 = arith.constant 0 : index
    %0 = vector.load %arg2[%c0, %c0_0] : memref<16x32xf32, #tpu.memory_space<vmem>>, vector<16x32xf32>
    %c0_1 = arith.constant 0 : index
    %c0_2 = arith.constant 0 : index
    %1 = vector.load %arg3[%c0_1, %c0_2] : memref<65x256xf32, #tpu.memory_space<vmem>>, vector<65x256xf32>
    %c0_3 = arith.constant 0 : index
    %c0_4 = arith.constant 0 : index
    %2 = vector.load %arg4[%c0_3, %c0_4] : memref<16x1xf32, #tpu.memory_space<vmem>>, vector<16x1xf32>
    %c0_5 = arith.constant 0 : index
    %c0_6 = arith.constant 0 : index
    %c0_7 = arith.constant 0 : index
    %3 = vector.load %arg1[%c0_5, %c0_6, %c0_7] : memref<1x65x32xf32, #tpu.memory_space<vmem>>, vector<1x65x32xf32>
    %4 = vector.shape_cast %3 : vector<1x65x32xf32> to vector<65x32xf32>
    %cst = arith.constant dense<0.000000e+00> : vector<16x65xf32>
    %5 = tpu.matmul %0, %4, %cst {dimension_numbers = #tpu.dot_dimension_numbers<[1], [1], [0], [0], [0, 0, 1, 0], [], []>} : vector<16x32xf32>, vector<65x32xf32>, vector<16x65xf32> -> vector<16x65xf32>
    %6 = vector.broadcast %2 : vector<16x1xf32> to vector<16x65xf32>
    %7 = arith.addf %5, %6 : vector<16x65xf32>
    %cst_8 = arith.constant 0.000000e+00 : f32
    %8 = vector.broadcast %cst_8 : f32 to vector<16x65xf32>
    %9 = arith.maximumf %7, %8 : vector<16x65xf32>
    %cst_9 = arith.constant dense<0.000000e+00> : vector<16x256xf32>
    %10 = tpu.matmul %9, %1, %cst_9 {dimension_numbers = #tpu.dot_dimension_numbers<[1], [0], [0], [1], [0, 0, 1, 1], [], []>, precision = #tpu.contract_precision<fp32>} : vector<16x65xf32>, vector<65x256xf32>, vector<16x256xf32> -> vector<16x256xf32>
    %c0_10 = arith.constant 0 : index
    %c0_11 = arith.constant 0 : index
    %c0_12 = arith.constant 0 : index
    %11 = vector.load %arg5[%c0_10, %c0_11, %c0_12] : memref<1x16x256xf32, #tpu.memory_space<vmem>>, vector<1x16x256xf32>
    %12 = vector.shape_cast %11 : vector<1x16x256xf32> to vector<16x256xf32>
    %13 = vector.shape_cast %10 : vector<16x256xf32> to vector<1x16x256xf32>
    tpu.vector_store %arg5[%c0_10, %c0_11, %c0_12], %13 {strides = array<i32>} : memref<1x16x256xf32, #tpu.memory_space<vmem>>, vector<1x16x256xf32>,
    return
  }
  func.func @transform_0(%arg0: i32) -> (i32, i32, i32) {
    %c0_i32 = arith.constant 0 : i32
    %c0_i32_0 = arith.constant 0 : i32
    %c0_i32_1 = arith.constant 0 : i32
    return %arg0, %c0_i32, %c0_i32_0 : i32, i32, i32
  }
  func.func @transform_1(%arg0: i32) -> (i32, i32) {
    %c0_i32 = arith.constant 0 : i32
    %c0_i32_0 = arith.constant 0 : i32
    %c0_i32_1 = arith.constant 0 : i32
    return %c0_i32, %c0_i32_0 : i32, i32
  }
  func.func @transform_2(%arg0: i32) -> (i32, i32) {
    %c0_i32 = arith.constant 0 : i32
    %c0_i32_0 = arith.constant 0 : i32
    %c0_i32_1 = arith.constant 0 : i32
    return %c0_i32, %c0_i32_0 : i32, i32
  }
  func.func @transform_3(%arg0: i32) -> (i32, i32) {
    %c0_i32 = arith.constant 0 : i32
    %c0_i32_0 = arith.constant 0 : i32
    %c0_i32_1 = arith.constant 0 : i32
    return %c0_i32, %c0_i32_0 : i32, i32
  }
  func.func @transform_4(%arg0: i32) -> (i32, i32, i32) {
    %c0_i32 = arith.constant 0 : i32
    %c0_i32_0 = arith.constant 0 : i32
    %c0_i32_1 = arith.constant 0 : i32
    return %arg0, %c0_i32, %c0_i32_0 : i32, i32, i32
  }
}

</mosaic_0001>

<bundles_post_ra>
// kernel: tpu_custom_call.1
= control target key start
LH: loop header
LB: loop body
LE: loop exit
PB: predicated region body
PF: predicated region fallthrough
CT: control target
= control target key end

     0   :  { %9 = vsyncpa [#allocation3], 0  ;;  %s1646_s0 = inlined_call_operand.vmem [shape: f32[2,65,32], index: 0, kind: input, shape index: {}]   ;;  %s1647_s1 = inlined_call_operand.vmem [shape: f32[16,32], index: 1, kind: input, shape index: {}]   ;;  %s1648_s2 = inlined_call_operand.vmem [shape: f32[65,256], index: 2, kind: input, shape index: {}]   ;;  %s1649_s3 = inlined_call_operand.vmem [shape: f32[16,1], index: 3, kind: input, shape index: {}]   ;;  %s1650_s4 = inlined_call_operand.hbm [shape: f32[2,16,256], index: 4, kind: output, shape index: {}]  }
   0x1   :  { %11 = vsyncpa [#allocation3 + $0x1], 0  ;;  %s1131_s15 = smov 0   ;;  %s1133_s16 = smov 0  }
   0x2   :  { %s1135_s17 = smov 0   ;;  %s1137_s18 = smov 0  }
   0x3 LB: > { %s1152_s19 = sadd.s32 4294967295, %s1101_s18   ;;  %s954_s20 = sadd.s32 4294967294, %s1101_s18   ;;  %s1101_s18 = sphi %s1137_s18, %s1656_s18   ;;  %s1097_s17 = sphi %s1135_s17, %s1655_s17   ;;  %s1093_s16 = sphi %s1133_s16, %s1654_s16   ;;  %s1089_s15 = sphi %s1131_s15, %s1653_s15  }
   0x4   : > { %s1156_s21 = sadd.s32 1, %s1101_s18   ;;  %s113_s22 = sadd.s32 1, %s1097_s17 }
   0x5   : > { %s110_s23 = ssub.s32 %s1101_s18, %s1156_s21  ;;  %p123_p0 = scmp.ne.s32.totalorder %s1097_s17, %s1093_s16 }
   0x6   : > { %p111_p1 = scmp.eq.s32.totalorder %s110_s23, 0  ;;  %p124_p2 = scmp.eq.s32.totalorder %s1152_s19, 1 }
   0x7   : > { %p129_p3 = scmp.ne.s32.totalorder %s1093_s16, %s1089_s15  ;;  %p130_p4 = scmp.eq.s32.totalorder %s954_s20, 1 }
   0x8   : > { %s1167_s24 = scalar_select %p111_p1, %s1097_s17, %s113_s22  }
   0x9   : > { %p1169_p5 = por %p124_p2, %p123_p0  ;;  %p1173_p6 = por %p130_p4, %p129_p3 }
   0xa   : > { %p957_p7 = scmp.ge.s32.totalorder %s1101_s18, 1  ;;  %p165_p8 = scmp.lt.s32.totalorder %s1101_s18, 3 }
   0xc   : > { %p166_p9 = pnand %p957_p7, %p165_p8 }
   0xd   : > { %p191_p10 = scmp.lt.s32.totalorder (!%p166_p9), %s1152_s19, 1  ;;  %s188_s22 = sand.u32 (!%p166_p9), 1, %s1093_s16  }
   0xe   : > { %169 = sbr.rel (%p166_p9) target bundleno = 382 (0x17e), region = 36  ;;  %s958_s23 = sshll.u32 (!%p166_p9), %s188_s22, 5 }
   0xf   : > { %s1059_s12 = scalar_lea.hbm (!%p166_p9), %s1650_s4, 64 }
  0x13   : > { %s192_s27 = scalar_select %p191_p10, %s1152_s19, 1  ;;  %vm237_vm0 = vcmask 261120   ;;  %v216_v2 = vld [vmem:[%s1649_s3] sm:$0xff]  ;;  %v1103_v3 = vmov 0   ;;  %v217_v6 = vld [vmem:[%s1649_s3 + $0x8] sm:$0xff]  ;;  %vm303_vm1 = vcmask 1040384  }
  0x14   : > { %1038 = vset.pattern.permute.xlu0 %v1103_v3  ;;  %v214_v7 = vld [vmem:[%s1648_s2 + $0x80] sm:$0x1]  ;;  %v212_v9 = vld [vmem:[%s1648_s2 + $0x70] sm:$0xff]  ;;  %v215_v23 = vld [vmem:[%s1648_s2 + $0x88] sm:$0x1]  ;;  %vm296_vm2 = vcmask 531456  }
  0x15   : > { %s995_s28 = smul.u32 72, %s192_s27  ;;  %229 = vperm.xlu0 %1038, %v216_v2   ;;  %v305_v8 = vsel %vm303_vm1, %v214_v7, 0  ;;  %v1210_v12 = vand.u32 4294901760, %v212_v9  ;;  %v1240_v25 = vsel %vm303_vm1, %v215_v23, 0  ;;  %v196_v28 = vld [vmem:[%s1647_s1] sm:$0xff]  ;;  %v197_v29 = vld [vmem:[%s1647_s1 + $0x8] sm:$0xff] }
  0x16   : > { %v1208_v11 = vand.u32 4294901760, %v305_v8  ;;  %v1245_v27 = vand.u32 4294901760, %v1240_v25  ;;  %v210_v30 = vld [vmem:[%s1648_s2 + $0x60] sm:$0xff]  ;;  %v208_v31 = vld [vmem:[%s1648_s2 + $0x50] sm:$0xff]  ;;  %v213_v2 = vld [vmem:[%s1648_s2 + $0x78] sm:$0xff]  ;;  %s1606_s27 = scalar_lea.vmem [#allocation2], %s958_s23 }
  0x17   : > { %s1184_s5 = scalar_lea.vmem %s1646_s0, %s995_s28  ;;  %v1216_v14 = vsub.f32 %v212_v9, %v1210_v12  ;;  %v206_v32 = vld [vmem:[%s1648_s2 + $0x40] sm:$0xff]  ;;  %v1266_v33 = vand.u32 4294901760, %v210_v30  ;;  %v1268_v34 = vand.u32 4294901760, %v208_v31  ;;  %v204_v36 = vld [vmem:[%s1648_s2 + $0x30] sm:$0xff]  ;;  %v211_v7 = vld [vmem:[%s1648_s2 + $0x68] sm:$0xff]  ;;  %s976_s28 = sshll.u32 %s1152_s19, 5 }
  0x18   : > { %v226_v0 = vld [vmem:[%s1184_s5 + $0x40] sm:$0x1]  ;;  %v225_v1 = vld [vmem:[%s1184_s5 + $0x38] sm:$0xff]  ;;  %v224_v4 = vld [vmem:[%s1184_s5 + $0x30] sm:$0xff]  ;;  %v1213_v13 = vsub.f32 %v305_v8, %v1208_v11  ;;  %318 = vmatpush.msra.mxu1 %v1208_v11  ;;  %v1270_v35 = vand.u32 4294901760, %v206_v32  ;;  %v1275_v37 = vand.u32 4294901760, %v204_v36 }
  0x19   : > { %960 = vmatpush.xpose.msk.msra.mxu0 %vm237_vm0, %v226_v0  ;;  %v223_v5 = vld [vmem:[%s1184_s5 + $0x28] sm:$0xff]  ;;  %v222_v10 = vld [vmem:[%s1184_s5 + $0x20] sm:$0xff]  ;;  %v221_v15 = vld [vmem:[%s1184_s5 + $0x18] sm:$0xff]  ;;  %v367_v17 = vand.u32 4294901760, %v1216_v14  ;;  %v1278_v38 = vsub.f32 %v210_v30, %v1266_v33  ;;  %v1281_v39 = vsub.f32 %v208_v31, %v1268_v34  ;;  %v1364_v9 = vand.u32 4294901760, %v211_v7  ;;  %s889_s6 = sshll.u32 %s1606_s27, 4  ;;  %s890_s6 = int_to_ptr.vmem [resolvable:$true] %s889_s6 }
  0x1a   : > { %v361_v16 = vand.u32 4294901760, %v1213_v13  ;;  %431 = vmatpush.msra.mxu3 %v1213_v13  ;;  %320 = vmatpush.msra.mxu1 %v1210_v12  ;;  %v220_v20 = vld [vmem:[%s1184_s5 + $0x10] sm:$0xff]  ;;  %v219_v24 = vld [vmem:[%s1184_s5 + $0x8] sm:$0xff]  ;;  %v218_v26 = vld [vmem:[%s1184_s5] sm:$0xff]  ;;  %v1284_v40 = vsub.f32 %v206_v32, %v1270_v35  ;;  %v1288_v41 = vsub.f32 %v204_v36, %v1275_v37  ;;  %s888_s5 = scalar_lea.hbm %s1650_s4, %s976_s28  ;;  %s877_s19 = scalar_lea.sflag [#allocation3], %s188_s22 }
  0x1b   : > { %v368_v19 = vsub.f32 %v1216_v14, %v367_v17  ;;  %v373_v42 = vand.u32 4294901760, %v1278_v38  ;;  %v379_v43 = vand.u32 4294901760, %v1281_v39  ;;  %v202_v54 = vld [vmem:[%s1648_s2 + $0x20] sm:$0xff]  ;;  %v200_v56 = vld [vmem:[%s1648_s2 + $0x10] sm:$0xff]  ;;  %v199_v23 = vld [vmem:[%s1648_s2 + $0x8] sm:$0xff]  ;;  %s891_s7 = sshll.u32 %s888_s5, 4  ;;  %s892_s7 = int_to_ptr.hbm [resolvable:$true] %s891_s7 }
  0x1c   : > { %v362_v18 = vsub.f32 %v1213_v13, %v361_v16  ;;  %434 = vmatpush.msra.mxu3 %v1216_v14  ;;  %322 = vmatpush.msra.mxu1 %v1266_v33  ;;  %v385_v44 = vand.u32 4294901760, %v1284_v40  ;;  %v391_v45 = vand.u32 4294901760, %v1288_v41  ;;  %v1316_v55 = vand.u32 4294901760, %v202_v54  ;;  %v198_v59 = vld [vmem:[%s1648_s2] sm:$0xff]  ;;  %v203_v13 = vld [vmem:[%s1648_s2 + $0x28] sm:$0xff]  ;;  %v201_v14 = vld [vmem:[%s1648_s2 + $0x18] sm:$0xff] }
  0x1d   : > { %961 = vmatpush.xpose.msk.msra.mxu0 %vm237_vm0, %v225_v1  ;;  %234 = vperm.xlu0 %1038, %v217_v6   ;;  %v369_v22 = vand.u32 4294901760, %v368_v19  ;;  %v374_v46 = vsub.f32 %v1278_v38, %v373_v42  ;;  %v380_v47 = vsub.f32 %v1281_v39, %v379_v43  ;;  %v1324_v58 = vand.u32 4294901760, %v200_v56  ;;  %v207_v19 = vld [vmem:[%s1648_s2 + $0x48] sm:$0xff]  ;;  %s1053_s8 = sshra.s32 %s892_s7, 4  ;;  %s1054_s8 = int_to_ptr.hbm [resolvable:$true] %s1053_s8 }
  0x1e   : > { %v363_v21 = vand.u32 4294901760, %v362_v18  ;;  %437 = vmatpush.msra.mxu3 %v1278_v38  ;;  %324 = vmatpush.msra.mxu1 %v1268_v34  ;;  %v386_v48 = vsub.f32 %v1284_v40, %v385_v44  ;;  %v392_v51 = vsub.f32 %v1288_v41, %v391_v45  ;;  %v1322_v57 = vsub.f32 %v202_v54, %v1316_v55  ;;  %s1055_s9 = scalar_lea.hbm %s1054_s8, 32  ;;  %p1060_p0 = scmp.lt.s32.totalorder %s1054_s8, %s1650_s4 }
  0x1f   : > { %v375_v49 = vand.u32 4294901760, %v374_v46  ;;  %v381_v50 = vand.u32 4294901760, %v380_v47  ;;  %v1332_v61 = vsub.f32 %v200_v56, %v1324_v58  ;;  %v1335_v62 = vand.u32 4294901760, %v198_v59  ;;  %p1056_p11 = scmp.ne.s32.totalorder %s1054_s8, %s1055_s9  ;;  %p1061_p1 = scmp.lt.s32.totalorder %s1059_s12, %s1055_s9 }
  0x20   : > { %364 = vmatpush.msra.mxu2 %v363_v21  ;;  %440 = vmatpush.msra.mxu3 %v1281_v39  ;;  %v387_v52 = vand.u32 4294901760, %v386_v48  ;;  %v393_v53 = vand.u32 4294901760, %v392_v51  ;;  %v397_v60 = vand.u32 4294901760, %v1322_v57 }
  0x21   : > { %962 = vmatpush.xpose.msk.msra.mxu0 %vm237_vm0, %v224_v4  ;;  %326 = vmatpush.msra.mxu1 %v1270_v35  ;;  %v403_v0 = vand.u32 4294901760, %v1332_v61  ;;  %v1343_v1 = vsub.f32 %v198_v59, %v1335_v62  ;;  %v1351_v4 = vand.u32 4294901760, %v213_v2  ;;  %p1057_p12 = pnand %p1056_p11, %p1169_p5  ;;  %p1062_p2 = por %p1061_p1, %p1060_p0 }
  0x22   : > { %370 = vmatpush.msra.mxu2 %v369_v22  ;;  %443 = vmatpush.msra.mxu3 %v1284_v40  ;;  %v398_v63 = vsub.f32 %v1322_v57, %v397_v60  ;;  %v1407_v22 = vsub.f32 %v1240_v25, %v1245_v27 }
  0x23   : > { %328 = vmatpush.msra.mxu1 %v1275_v37  ;;  %v409_v6 = vand.u32 4294901760, %v1343_v1  ;;  %p1058_p13 = pneg %p1057_p12 }
  0x24   : > { %376 = vmatpush.msra.mxu2 %v375_v49  ;;  %446 = vmatpush.msra.mxu3 %v1288_v41  ;;  %v399_v3 = vand.u32 4294901760, %v398_v63  ;;  %v1432_v25 = vand.u32 4294901760, %v1407_v22 }
  0x25   : > { %963 = vmatpush.xpose.msk.msra.mxu0 %vm237_vm0, %v223_v5  ;;  %330 = vmatpush.msra.mxu1 %v1316_v55  ;;  %v404_v5 = vsub.f32 %v1332_v61, %v403_v0  ;;  %p1063_p3 = pnand %p1062_p2, %p1058_p13 }
  0x26   : > { %382 = vmatpush.msra.mxu2 %v381_v50  ;;  %449 = vmatpush.msra.mxu3 %v1322_v57 }
  0x27   : > { %332 = vmatpush.msra.mxu1 %v1324_v58  ;;  %v405_v8 = vand.u32 4294901760, %v404_v5 }
  0x28   : > { %388 = vmatpush.msra.mxu2 %v387_v52  ;;  %452 = vmatpush.msra.mxu3 %v1332_v61 }
  0x29   : > { %964 = vmatpush.xpose.msk.msra.mxu0 %vm237_vm0, %v222_v10  ;;  %334 = vmatpush.msra.mxu1 %v1335_v62  ;;  %v410_v10 = vsub.f32 %v1343_v1, %v409_v6 }
  0x2a   : > { %394 = vmatpush.msra.mxu2 %v393_v53  ;;  %455 = vmatpush.msra.mxu3 %v1343_v1  ;;  %v643_v53 = vsub.f32 %v1407_v22, %v1432_v25 }
  0x2b   : > { %475 = vmatpush.msrb.mxu1 %v1208_v11 }
  0x2c   : > { %565 = vmatpush.msrb.mxu3 %v1208_v11  ;;  %400 = vmatpush.msra.mxu2 %v399_v3  ;;  %v411_v11 = vand.u32 4294901760, %v410_v10  ;;  %v644_v59 = vand.u32 4294901760, %v643_v53 }
  0x2d   : > { %965 = vmatpush.xpose.msk.msra.mxu0 %vm237_vm0, %v221_v15  ;;  %477 = vmatpush.msrb.mxu1 %v1210_v12  ;;  %v209_v15 = vld [vmem:[%s1648_s2 + $0x58] sm:$0xff] }
  0x2e   : > { %567 = vmatpush.msrb.mxu3 %v1210_v12  ;;  %406 = vmatpush.msra.mxu2 %v405_v8  ;;  %v1375_v18 = vand.u32 4294901760, %v209_v15  ;;  %v1383_v12 = vand.u32 4294901760, %v207_v19 }
  0x2f   : > { %479 = vmatpush.msrb.mxu1 %v1266_v33 }
  0x30   : > { %569 = vmatpush.msrb.mxu3 %v1266_v33  ;;  %412 = vmatpush.msra.mxu2 %v411_v11  ;;  %v1454_v31 = vsub.f32 %v209_v15, %v1375_v18  ;;  %v1457_v32 = vsub.f32 %v207_v19, %v1383_v12 }
  0x31   : > { %966 = vmatpush.xpose.msk.msra.mxu0 %vm237_vm0, %v220_v20  ;;  %481 = vmatpush.msrb.mxu1 %v1268_v34  ;;  %v205_v20 = vld [vmem:[%s1648_s2 + $0x38] sm:$0xff] }
  0x32   : > { %515 = vmatpush.msrb.mxu2 %v361_v16  ;;  %571 = vmatpush.msrb.mxu3 %v1268_v34  ;;  %v1392_v21 = vand.u32 4294901760, %v205_v20  ;;  %v1402_v16 = vand.u32 4294901760, %v203_v13  ;;  %v1463_v33 = vand.u32 4294901760, %v1454_v31  ;;  %v1466_v34 = vand.u32 4294901760, %v1457_v32 }
  0x33   : > { %483 = vmatpush.msrb.mxu1 %v1270_v35 }
  0x34   : > { %519 = vmatpush.msrb.mxu2 %v367_v17  ;;  %573 = vmatpush.msrb.mxu3 %v1270_v35  ;;  %v1416_v17 = vand.u32 4294901760, %v201_v14  ;;  %v1472_v35 = vsub.f32 %v205_v20, %v1392_v21  ;;  %v667_v5 = vsub.f32 %v1457_v32, %v1466_v34 }
  0x35   : > { %967 = vmatpush.xpose.msk.msra.mxu0 %vm237_vm0, %v219_v24  ;;  %485 = vmatpush.msrb.mxu1 %v1275_v37  ;;  %v1426_v24 = vand.u32 4294901760, %v199_v23 }
  0x36   : > { %523 = vmatpush.msrb.mxu2 %v373_v42  ;;  %575 = vmatpush.msrb.mxu3 %v1275_v37  ;;  %v1476_v36 = vand.u32 4294901760, %v1472_v35  ;;  %v1479_v37 = vsub.f32 %v203_v13, %v1402_v16  ;;  %v1486_v39 = vsub.f32 %v201_v14, %v1416_v17  ;;  %v668_v15 = vand.u32 4294901760, %v667_v5 }
  0x37   : > { %487 = vmatpush.msrb.mxu1 %v1316_v55  ;;  %v1489_v40 = vsub.f32 %v199_v23, %v1426_v24 }
  0x38   : > { %527 = vmatpush.msrb.mxu2 %v379_v43  ;;  %577 = vmatpush.msrb.mxu3 %v1316_v55  ;;  %v1483_v38 = vand.u32 4294901760, %v1479_v37  ;;  %v1493_v41 = vand.u32 4294901760, %v1486_v39  ;;  %v673_v8 = vsub.f32 %v1472_v35, %v1476_v36 }
  0x39   : > { %968 = vmatpush.xpose.msk.msra.mxu0 %vm237_vm0, %v218_v26  ;;  %489 = vmatpush.msrb.mxu1 %v1324_v58  ;;  %v647_v26 = vsub.f32 %v213_v2, %v1351_v4  ;;  %v1496_v42 = vand.u32 4294901760, %v1489_v40 }
  0x3a   : > { %531 = vmatpush.msrb.mxu2 %v385_v44  ;;  %579 = vmatpush.msrb.mxu3 %v1324_v58  ;;  %v679_v11 = vsub.f32 %v1479_v37, %v1483_v38  ;;  %v674_v19 = vand.u32 4294901760, %v673_v8  ;;  %v685_v13 = vsub.f32 %v1486_v39, %v1493_v41 }
  0x3b   : > { %491 = vmatpush.msrb.mxu1 %v1335_v62 }
  0x3c   : > { %969 = vmatmul.msk.f32.vlgmr.msra.gmra.mxu0 %vm237_vm0, %v196_v28  ;;  %535 = vmatpush.msrb.mxu2 %v391_v45  ;;  %v1441_v28 = vand.u32 4294901760, %v647_v26  ;;  %v680_v20 = vand.u32 4294901760, %v679_v11  ;;  %v686_v14 = vand.u32 4294901760, %v685_v13 }
  0x3d   : > { %599 = vmatpush.msrb.mxu0 %v1245_v27  ;;  %581 = vmatpush.msrb.mxu3 %v1335_v62 }
  0x3e   : > { %539 = vmatpush.msrb.mxu2 %v397_v60  ;;  %v649_v56 = vsub.f32 %v647_v26, %v1441_v28 }
  0x3f   : > { %601 = vmatpush.msrb.mxu0 %v1351_v4 }
  0x40   : > { %543 = vmatpush.msrb.mxu2 %v403_v0  ;;  %v650_v63 = vand.u32 4294901760, %v649_v56  ;;  %v661_v0 = vsub.f32 %v1454_v31, %v1463_v33 }
  0x41   : > { %603 = vmatpush.msrb.mxu0 %v1364_v9 }
  0x42   : > { %547 = vmatpush.msrb.mxu2 %v409_v6  ;;  %v662_v6 = vand.u32 4294901760, %v661_v0 }
  0x43   : > { %605 = vmatpush.msrb.mxu0 %v1375_v18 }
  0x44   : > { %970 = vmatmul.msk.f32.gmra.mxu0 %vm237_vm0, %v197_v29  ;;  %v1444_v29 = vsub.f32 %v211_v7, %v1364_v9 }
  0x45   : > { %607 = vmatpush.msrb.mxu0 %v1383_v12 }
  0x46   : > { %v1451_v30 = vand.u32 4294901760, %v1444_v29 }
  0x47   : > { %609 = vmatpush.msrb.mxu0 %v1392_v21 }
  0x48   : > { %v655_v60 = vsub.f32 %v1444_v29, %v1451_v30 }
  0x49   : > { %611 = vmatpush.msrb.mxu0 %v1402_v16 }
  0x4a   : > { %v656_v2 = vand.u32 4294901760, %v655_v60 }
  0x4b   : > { %613 = vmatpush.msrb.mxu0 %v1416_v17 }
  0x4d   : > { %615 = vmatpush.msrb.mxu0 %v1426_v24 }
  0x4f   : > { %796 = vmatpush.msra.mxu0 %v1432_v25 }
  0x51   : > { %800 = vmatpush.msra.mxu0 %v1441_v28 }
  0x53   : > { %804 = vmatpush.msra.mxu0 %v1451_v30 }
  0x55   : > { %808 = vmatpush.msra.mxu0 %v1463_v33 }
  0x57   : > { %812 = vmatpush.msra.mxu0 %v1466_v34 }
  0x59   : > { %816 = vmatpush.msra.mxu0 %v1476_v36 }
  0x5b   : > { %820 = vmatpush.msra.mxu0 %v1483_v38 }
  0x5d   : > { %824 = vmatpush.msra.mxu0 %v1493_v41 }
  0x5f   : > { %828 = vmatpush.msra.mxu0 %v1496_v42 }
  0x87   : > { %v230_v43 = vpop.permute.xlu0 %229 }
  0x8f   : > { %v235_v49 = vpop.permute.xlu0 %234 }
  0xb9   : > { %v288_v44 = vpop.f32.mrf.mxu0 }
  0xba   : > { %v289_v45 = vadd.f32 %v288_v44, %v230_v43 }
  0xbc   : > { %v294_v46 = vmax.f32 %v289_v45, 0.0 }
  0xbe   : > { %v298_v47 = vsel %vm296_vm2, %v294_v46, 0 }
  0xbf   : > { %v1501_v48 = vand.u32 4294901760, %v298_v47 }
  0xc1   : > { %v1504_v50 = vsub.f32 %v298_v47, %v1501_v48  ;;  %v291_v51 = vpop.f32.mrf.mxu0  ;;  %414 = vmatmul.f32.vlgmr.msra.gmra.mxu2 %v1501_v48 }
  0xc2   : > { %v292_v52 = vadd.f32 %v291_v51, %v235_v49  ;;  %712 = vmatpush.msra.mxu2 %v1407_v22  ;;  %v691_v22 = vsub.f32 %v1489_v40, %v1496_v42 }
  0xc3   : > { %458 = vmatmul.f32.vlgmr.msra.gmra.mxu3 %v1504_v50  ;;  %v1512_v54 = vand.u32 4294901760, %v1504_v50 }
  0xc4   : > { %v295_v55 = vmax.f32 %v292_v52, 0.0  ;;  %715 = vmatpush.msra.mxu2 %v647_v26  ;;  %756 = vmatpush.msra.mxu3 %v1245_v27  ;;  %v692_v23 = vand.u32 4294901760, %v691_v22 }
  0xc5   : > { %v338_v57 = vsub.f32 %v1504_v50, %v1512_v54 }
  0xc6   : > { %v301_v58 = vsel %vm296_vm2, %v295_v55, 0  ;;  %718 = vmatpush.msra.mxu2 %v1444_v29  ;;  %758 = vmatpush.msra.mxu3 %v1351_v4 }
  0xc7   : > { %v1523_v61 = vand.u32 4294901760, %v301_v58  ;;  %v339_v62 = vand.u32 4294901760, %v338_v57 }
  0xc8   : > { %721 = vmatpush.msra.mxu2 %v1454_v31  ;;  %760 = vmatpush.msra.mxu3 %v1364_v9 }
  0xc9   : > { %v1530_v1 = vsub.f32 %v301_v58, %v1523_v61  ;;  %340 = vmatmul.f32.vlgmr.msra.gmra.mxu1 %v339_v62  ;;  %418 = vmatmul.f32.gmra.mxu2 %v1523_v61 }
  0xca   : > { %621 = vmatmul.f32.vlgmr.msrb.gmra.mxu0 %v339_v62  ;;  %645 = vmatpush.msra.mxu1 %v644_v59 }
  0xcb   : > { %463 = vmatmul.f32.gmra.mxu3 %v1530_v1  ;;  %v1535_v3 = vand.u32 4294901760, %v1530_v1  ;;  %724 = vmatpush.msra.mxu2 %v1457_v32 }
  0xcc   : > { %762 = vmatpush.msra.mxu3 %v1375_v18  ;;  %651 = vmatpush.msra.mxu1 %v650_v63 }
  0xcd   : > { %v346_v7 = vsub.f32 %v1530_v1, %v1535_v3  ;;  %727 = vmatpush.msra.mxu2 %v1472_v35 }
  0xce   : > { %764 = vmatpush.msra.mxu3 %v1383_v12  ;;  %657 = vmatpush.msra.mxu1 %v656_v2 }
  0xcf   : > { %v347_v10 = vand.u32 4294901760, %v346_v7  ;;  %730 = vmatpush.msra.mxu2 %v1479_v37 }
  0xd0   : > { %766 = vmatpush.msra.mxu3 %v1392_v21  ;;  %663 = vmatpush.msra.mxu1 %v662_v6 }
  0xd1   : > { %348 = vmatmul.f32.gmra.mxu1 %v347_v10  ;;  %549 = vmatmul.f32.vlgmr.msrb.gmra.mxu2 %v1501_v48 }
  0xd2   : > { %629 = vmatmul.f32.gmra.mxu0 %v347_v10  ;;  %733 = vmatpush.msra.mxu2 %v1486_v39 }
  0xd3   : > { %583 = vmatmul.f32.vlgmr.msrb.gmra.mxu3 %v1501_v48  ;;  %669 = vmatpush.msra.mxu1 %v668_v15 }
  0xd4   : > { %768 = vmatpush.msra.mxu3 %v1402_v16  ;;  %736 = vmatpush.msra.mxu2 %v1489_v40 }
  0xd5   : > { %675 = vmatpush.msra.mxu1 %v674_v19 }
  0xd6   : > { %977 = vmatpush.msrb.mxu2 %v1432_v25  ;;  %770 = vmatpush.msra.mxu3 %v1416_v17 }
  0xd7   : > { %681 = vmatpush.msra.mxu1 %v680_v20 }
  0xd8   : > { %978 = vmatpush.msrb.mxu2 %v1441_v28  ;;  %772 = vmatpush.msra.mxu3 %v1426_v24 }
  0xd9   : > { %495 = vmatmul.f32.vlgmr.msrb.gmra.mxu1 %v1512_v54  ;;  %553 = vmatmul.f32.gmra.mxu2 %v1523_v61 }
  0xda   : > { %830 = vmatmul.f32.vlgmr.msra.gmra.mxu0 %v1501_v48  ;;  %986 = vmatpush.msrb.mxu3 %v1245_v27 }
  0xdb   : > { %587 = vmatmul.f32.gmra.mxu3 %v1523_v61  ;;  %979 = vmatpush.msrb.mxu2 %v1451_v30 }
  0xdc   : > { %987 = vmatpush.msrb.mxu3 %v1351_v4  ;;  %687 = vmatpush.msra.mxu1 %v686_v14 }
  0xdd   : > { %980 = vmatpush.msrb.mxu2 %v1463_v33 }
  0xde   : > { %988 = vmatpush.msrb.mxu3 %v1364_v9  ;;  %693 = vmatpush.msra.mxu1 %v692_v23 }
  0xdf   : > { %981 = vmatpush.msrb.mxu2 %v1466_v34 }
  0xe0   : > { %846 = vmatpush.msrb.mxu1 %v1245_v27  ;;  %989 = vmatpush.msrb.mxu3 %v1375_v18 }
  0xe1   : > { %501 = vmatmul.f32.gmra.mxu1 %v1535_v3  ;;  %739 = vmatmul.f32.vlgmr.msra.gmra.mxu2 %v1504_v50 }
  0xe2   : > { %982 = vmatpush.msrb.mxu2 %v1476_v36  ;;  %848 = vmatpush.msrb.mxu1 %v1351_v4 }
  0xe3   : > { %776 = vmatmul.f32.vlgmr.msra.gmra.mxu3 %v1512_v54 }
  0xe4   : > { %990 = vmatpush.msrb.mxu3 %v1383_v12  ;;  %983 = vmatpush.msrb.mxu2 %v1483_v38 }
  0xe5   : > { %850 = vmatpush.msrb.mxu1 %v1364_v9 }
  0xe6   : > { %991 = vmatpush.msrb.mxu3 %v1392_v21  ;;  %984 = vmatpush.msrb.mxu2 %v1493_v41 }
  0xe7   : > { %852 = vmatpush.msrb.mxu1 %v1375_v18 }
  0xe8   : > { %992 = vmatpush.msrb.mxu3 %v1402_v16  ;;  %985 = vmatpush.msrb.mxu2 %v1496_v42 }
  0xe9   : > { %695 = vmatmul.f32.vlgmr.msra.gmra.mxu1 %v1501_v48  ;;  %744 = vmatmul.f32.gmra.mxu2 %v1530_v1 }
  0xea   : > { %854 = vmatpush.msrb.mxu1 %v1383_v12  ;;  %993 = vmatpush.msrb.mxu3 %v1416_v17 }
  0xeb   : > { %782 = vmatmul.f32.gmra.mxu3 %v1535_v3 }
  0xec   : > { %856 = vmatpush.msrb.mxu1 %v1392_v21  ;;  %994 = vmatpush.msrb.mxu3 %v1426_v24 }
  0xee   : > { %858 = vmatpush.msrb.mxu1 %v1402_v16 }
  0xf0   : > { %860 = vmatpush.msrb.mxu1 %v1416_v17 }
  0xf1   : > { %699 = vmatmul.f32.gmra.mxu1 %v1523_v61  ;;  %834 = vmatmul.f32.vlgmr.msrb.gmra.mxu2 %v1523_v61 }
  0xf2   : > { %862 = vmatpush.msrb.mxu1 %v1426_v24 }
  0xf3   : > { %868 = vmatmul.f32.vlgmr.msrb.gmra.mxu3 %v1523_v61 }
  0xf9   : > { %864 = vmatmul.f32.vlgmr.msrb.gmra.mxu1 %v1501_v48 }
 0x144   : > { %v415_v27 = vpop.f32.mrf.mxu2 }
 0x146   : > { %v341_v4 = vpop.f32.mrf.mxu1  ;;  %v459_v9 = vpop.f32.mrf.mxu3 }
 0x147   : > { %v416_v16 = vadd.f32 %v415_v27, %v341_v4  ;;  %v622_v37 = vpop.f32.mrf.mxu0 }
 0x149   : > { %v460_v17 = vadd.f32 %v459_v9, %v416_v16 }
 0x14c   : > { %v419_v18 = vpop.f32.mrf.mxu2 }
 0x14e   : > { %v349_v12 = vpop.f32.mrf.mxu1  ;;  %v464_v21 = vpop.f32.mrf.mxu3 }
 0x14f   : > { %v420_v24 = vadd.f32 %v419_v18, %v349_v12  ;;  %v630_v44 = vpop.f32.mrf.mxu0 }
 0x151   : > { %v465_v33 = vadd.f32 %v464_v21, %v420_v24 }
 0x154   : > { %v550_v25 = vpop.f32.mrf.mxu2 }
 0x156   : > { %v496_v26 = vpop.f32.mrf.mxu1  ;;  %v584_v28 = vpop.f32.mrf.mxu3 }
 0x157   : > { %v497_v29 = vadd.f32 %v496_v26, %v460_v17  ;;  %v831_v53 = vpop.f32.mrf.mxu0 }
 0x159   : > { %v551_v30 = vadd.f32 %v550_v25, %v497_v29 }
 0x15b   : > { %v585_v31 = vadd.f32 %v584_v28, %v551_v30 }
 0x15c   : > { %v554_v32 = vpop.f32.mrf.mxu2 }
 0x15d   : > { %872 = vst [vmem:[%s1606_s27] sm:$0xff] %v585_v31 }
 0x15e   : > { %v502_v34 = vpop.f32.mrf.mxu1  ;;  %v588_v35 = vpop.f32.mrf.mxu3 }
 0x15f   : > { %v503_v36 = vadd.f32 %v502_v34, %v465_v33 }
 0x161   : > { %v555_v38 = vadd.f32 %v554_v32, %v503_v36 }
 0x163   : > { %v589_v39 = vadd.f32 %v588_v35, %v555_v38 }
 0x164   : > { %v740_v40 = vpop.f32.mrf.mxu2 }
 0x165   : > { %874 = vst [vmem:[%s1606_s27 + $0x10] sm:$0xff] %v589_v39 }
 0x166   : > { %v696_v41 = vpop.f32.mrf.mxu1  ;;  %v777_v42 = vpop.f32.mrf.mxu3 }
 0x167   : > { %v697_v43 = vadd.f32 %v696_v41, %v622_v37 }
 0x169   : > { %v741_v46 = vadd.f32 %v740_v40, %v697_v43 }
 0x16b   : > { %v778_v50 = vadd.f32 %v777_v42, %v741_v46 }
 0x16c   : > { %v745_v45 = vpop.f32.mrf.mxu2 }
 0x16d   : > { %v832_v56 = vadd.f32 %v831_v53, %v778_v50 }
 0x16e   : > { %v700_v47 = vpop.f32.mrf.mxu1  ;;  %v783_v48 = vpop.f32.mrf.mxu3 }
 0x16f   : > { %v701_v49 = vadd.f32 %v700_v47, %v630_v44 }
 0x171   : > { %v746_v51 = vadd.f32 %v745_v45, %v701_v49 }
 0x173   : > { %v784_v52 = vadd.f32 %v783_v48, %v746_v51 }
 0x174   : > { %v835_v54 = vpop.f32.mrf.mxu2 }
 0x175   : > { %v836_v55 = vadd.f32 %v835_v54, %v784_v52 }
 0x176   : > { %v865_v57 = vpop.f32.mrf.mxu1  ;;  %v869_v58 = vpop.f32.mrf.mxu3 }
 0x177   : > { %v866_v59 = vadd.f32 %v865_v57, %v832_v56  ;;  %v870_v60 = vadd.f32 %v869_v58, %v836_v55 }
 0x179   : > { %873 = vst [vmem:[%s1606_s27 + $0x8] sm:$0xff] %v866_v59 }
 0x17a   : > { %875 = vst [vmem:[%s1606_s27 + $0x18] sm:$0xff] %v870_v60 }
 0x17b   : > { %1066 = shalt.err (!%p1063_p3)
}
 0x17c   : > { %s1104_s20 = smov 256   ;;  %s1105_s22 = smov 16  }
 0x17d   : > { %996 = dma.vmem_to_hbm [thread:$0]  (%p1169_p5), %s890_s6, 512, %s892_s7, %s877_s19, %s1104_s20, %s1104_s20, %s1105_s22  }
 0x17e PF: > { %p1002_p4 = scmp.ge.s32.totalorder %s1101_s18, 2  ;;  %s906_s23 = sand.u32 1, %s1089_s15  }
 0x17f   : > { %s907_s27 = scalar_lea.sflag [#allocation3], %s906_s23 }
 0x180   : > { %p999_p7 = pnand %p1002_p4, %p1173_p6 }
 0x182   : > { %p1000_p8 = pneg %p999_p7 }
 0x184   : > { %1084 = dma.done.wait (%p1000_p8), %s907_s27, 512  }
 0x185   : > { %1086 = vsyncadd (%p1000_p8), %s907_s27, 4294966784  ;;  %p14_p9 = scmp.ge.s32.totalorder %s1156_s21, 4   ;;  %s1653_s15 = smov %s1093_s16 }
 0x186   : > { %s1654_s16 = smov %s1097_s17  ;;  %s1655_s17 = smov %s1167_s24 }
 0x187   : > { %s1656_s18 = smov %s1156_s21  ;;  %16 = sbr.rel (!%p14_p9) target bundleno = 3 (0x3), region = 71 }
 0x18c   :  { %913 = vsyncpa [#allocation3], 1 }
 0x18d   :  { %915 = vsyncpa [#allocation3 + $0x1], 1 }

</bundles_post_ra>
